<compile_context>
chip_gen: v7x
topology: tpu7x:2x2x1
jax: 0.10.0
libtpu: 0.0.40
codegen_flags: <defaults>
</compile_context>

<pallas_src>
import functools

import jax
import jax.numpy as jnp
from jax.experimental import pallas as pl
from jax.experimental.pallas import tpu as pltpu


def cross_attention_kernel(q_ref, k_ref,
                           wk_ref, wv_ref,
                           wq_ref, bq_ref,
                           wproj_ref, bproj_ref,
                           o_ref,
                           kh_s, vh_s,
                           *, num_heads):
    H = num_heads

    # ---- per-batch K/V head tensors: compute once (first q tile), keep in VMEM
    @pl.when(pl.program_id(1) == 0)
    def _():
        k = k_ref[0]                                            # (N, Dk) bf16
        n = k.shape[0]
        dk = wk_ref.shape[1]
        hd = dk // H
        k_part = jnp.dot(k, wk_ref[...],
                         preferred_element_type=jnp.float32)   # (N, Dk) f32 acc
        v_part = jnp.dot(k, wv_ref[...],
                         preferred_element_type=jnp.float32)   # (N, Dk)
        kh_s[...] = (k_part.reshape(n, H, hd)
                     .transpose(1, 0, 2)).astype(kh_s.dtype)   # (H, N, hd) bf16
        vh_s[...] = (v_part.reshape(n, H, hd)
                     .transpose(1, 0, 2)).astype(vh_s.dtype)

    # ---- per-q-tile attention ----
    q = q_ref[0]                                                # (tq, Dq) bf16
    tq = q.shape[0]
    hd = wproj_ref.shape[1]
    dk = wproj_ref.shape[2]

    # scale is pre-folded into wq / bq in the wrapper
    qp = (jnp.dot(q, wq_ref[...], preferred_element_type=jnp.float32)
          + bq_ref[0])                                          # (tq, Dk) f32
    qh = (qp.reshape(tq, H, hd)
          .transpose(1, 0, 2)).astype(jnp.bfloat16)             # (H, tq, hd)

    scores = jnp.einsum("hqd,hkd->hqk", qh, kh_s[...],
                        preferred_element_type=jnp.float32)     # (H, tq, N) f32

    m = jnp.max(scores, axis=-1, keepdims=True)                 # f32 statistics
    p = jnp.exp((scores - m).astype(jnp.bfloat16))              # bf16 exp (EUP)
    denom = jnp.sum(p, axis=-1, keepdims=True,
                    dtype=jnp.float32)                          # f32 denom

    ctx = jnp.einsum("hqk,hkd->hqd", p, vh_s[...],
                     preferred_element_type=jnp.float32)        # (H, tq, hd) f32
    # normalise AFTER the PV matmul: (H,tq,hd) mults instead of (H,tq,N)
    ctx = (ctx * pl.reciprocal(denom, approx=True)).astype(jnp.bfloat16)

    # per-head output projection, head-merge folded into a sum over heads
    outh = jnp.einsum("hqd,hdf->hqf", ctx, wproj_ref[...],
                      preferred_element_type=jnp.float32)       # (H, tq, Dk) f32
    out = jnp.sum(outh, axis=0) + bproj_ref[0]                  # (tq, Dk)
    o_ref[0] = out.astype(o_ref.dtype)


def cross_attention_forward(q, k, params, num_heads, *, q_tile=None):
    B, N, Dk = k.shape
    Bq, Nq, Dq = q.shape
    assert B == Bq and Nq == N, "q and k must share batch / sequence length"
    assert Dk % num_heads == 0
    hd = Dk // num_heads
    scale = hd ** (-0.5)
    out_dtype = q.dtype

    # ---- wrapper-side layout / dtype plumbing (free: runs in XLA, not VMEM) ----
    q_bf = q.astype(jnp.bfloat16)
    k_bf = k.astype(jnp.bfloat16)
    wk = params["wk"].astype(jnp.bfloat16)
    wv = params["wv"].astype(jnp.bfloat16)
    wq = (params["wq"] * scale).astype(jnp.bfloat16)          # scale folded in
    bq = (params["bq"] * scale).astype(jnp.float32)           # (1, Dk)
    wproj_h = params["wproj"].reshape(num_heads, hd, Dk).astype(jnp.bfloat16)
    bproj = params["bproj"].astype(jnp.float32)               # (1, Dk)

    # ---- query-tile heuristic ----
    if q_tile is None:
        if N <= 512:
            q_tile = N
        else:
            for cand in (512, 256, 128):
                if N % cand == 0:
                    q_tile = cand
                    break
            else:
                # TODO(synk): masked/ragged query tiles for large N not divisible by 128
                q_tile = N
        # keep the (H, q_tile, N) f32+bf16 score block modest (v7x: 64 MiB VMEM)
        while q_tile > 128 and q_tile % 2 == 0 and \
                num_heads * q_tile * N * 6 > 12 * 1024 * 1024:
            q_tile //= 2
    assert N % q_tile == 0
    n_qt = N // q_tile

    # ---- VMEM limit: use what the chip actually has (v5e/v6e 128 MiB, v7x 64 MiB)
    try:
        vmem_cap = int(pltpu.get_tpu_info().vmem_capacity_bytes)
    except Exception:
        vmem_cap = 64 * 1024 * 1024
    vmem_limit = min(96 * 1024 * 1024, (vmem_cap * 3) // 4)

    # ---- advisory cost estimate for XLA's scheduler ----
    flops = 2 * B * N * (2 * Dk * Dk + Dq * Dk + Dk * Dk) + 4 * B * N * N * Dk
    transcendentals = B * num_heads * N * N
    bytes_accessed = (2 * B * N * (Dq + Dk)                 # bf16 activations in
                      + 2 * (3 * Dk * Dk + Dq * Dk)         # bf16 weights
                      + 4 * 2 * Dk                          # f32 biases
                      + jnp.dtype(out_dtype).itemsize * B * N * Dk)  # output

    const2d = lambda r, c: pl.BlockSpec((r, c), lambda b, t: (0, 0))

    kernel = functools.partial(cross_attention_kernel, num_heads=num_heads)

    return pl.pallas_call(
        kernel,
        out_shape=jax.ShapeDtypeStruct((B, N, Dk), out_dtype),
        grid_spec=pltpu.PrefetchScalarGridSpec(
            num_scalar_prefetch=0,
            grid=(B, n_qt),
            in_specs=[
                pl.BlockSpec((1, q_tile, Dq), lambda b, t: (b, t, 0)),   # q (bf16)
                pl.BlockSpec((1, N, Dk), lambda b, t: (b, 0, 0)),        # k (bf16)
                const2d(Dk, Dk),                                         # wk
                const2d(Dk, Dk),                                         # wv
                const2d(Dq, Dk),                                         # wq (scaled)
                const2d(1, Dk),                                          # bq (scaled)
                pl.BlockSpec((num_heads, hd, Dk), lambda b, t: (0, 0, 0)),  # wproj per-head
                const2d(1, Dk),                                          # bproj
            ],
            out_specs=pl.BlockSpec((1, q_tile, Dk), lambda b, t: (b, t, 0)),
            scratch_shapes=[
                pltpu.VMEM((num_heads, N, hd), jnp.bfloat16),   # K heads
                pltpu.VMEM((num_heads, N, hd), jnp.bfloat16),   # V heads
            ],
        ),
        compiler_params=pltpu.CompilerParams(
            dimension_semantics=("parallel", "arbitrary"),
            vmem_limit_bytes=int(vmem_limit),
        ),
        cost_estimate=pl.CostEstimate(
            flops=int(flops),
            transcendentals=int(transcendentals),
            bytes_accessed=int(bytes_accessed),
        ),
    )(q_bf, k_bf, wk, wv, wq, bq, wproj_h, bproj)


def cross_attention_reference(q, k, params, num_heads):
    """Pure-JAX (f32) reference mirroring the PyTorch forward in eval mode."""
    B, N, K = k.shape
    hd = K // num_heads
    scale = hd ** (-0.5)

    k_part = k @ params["wk"]
    v_part = k @ params["wv"]
    kh = k_part.reshape(B, N, num_heads, hd).transpose(0, 2, 1, 3)
    vh = v_part.reshape(B, N, num_heads, hd).transpose(0, 2, 1, 3)

    qp = q @ params["wq"] + params["bq"][0]
    qh = qp.reshape(B, N, num_heads, hd).transpose(0, 2, 1, 3)

    attn = jnp.einsum("bhnd,bhmd->bhnm", qh, kh) * scale
    attn = jax.nn.softmax(attn, axis=-1)
    ctx = jnp.einsum("bhnm,bhmd->bhnd", attn, vh)
    ctx = ctx.transpose(0, 2, 1, 3).reshape(B, N, K)
    return ctx @ params["wproj"] + params["bproj"][0]


def make_params(key, q_dim, k_dim):
    ks = jax.random.split(key, 6)
    std = 0.02
    return {
        "wk": std * jax.random.normal(ks[0], (k_dim, k_dim), jnp.float32),
        "wv": std * jax.random.normal(ks[1], (k_dim, k_dim), jnp.float32),
        "wq": std * jax.random.normal(ks[2], (q_dim, k_dim), jnp.float32),
        "bq": std * jax.random.normal(ks[3], (1, k_dim), jnp.float32),
        "wproj": std * jax.random.normal(ks[4], (k_dim, k_dim), jnp.float32),
        "bproj": std * jax.random.normal(ks[5], (1, k_dim), jnp.float32),
    }


if __name__ == "__main__":
    B, N = 2, 8
    k_dim, q_dim = 32, 16
    num_heads = 4

    key = jax.random.PRNGKey(0)
    kq, kk, kp = jax.random.split(key, 3)
    q = jax.random.normal(kq, (B, N, q_dim), jnp.float32)
    k = jax.random.normal(kk, (B, N, k_dim), jnp.float32)
    params = make_params(kp, q_dim, k_dim)

    out = cross_attention_forward(q, k, params, num_heads)
    out = jax.block_until_ready(out)

    ref = cross_attention_reference(q, k, params, num_heads)
    assert out.shape == (B, N, k_dim)
    max_err = float(jnp.max(jnp.abs(out - ref)))
    # bf16 MXU operands + bf16 exp + approx reciprocal => loosened tolerance
    assert max_err < 2e-2, max_err

    print("KERNEL_OK")
</pallas_src>

<mosaic_0001>
module attributes {stable_mosaic.version = 11 : i64} {
  func.func @cross_attention_kernel(%arg0: i32, %arg1: i32, %arg2: memref<1x8x16xbf16, #tpu.memory_space<vmem>>, %arg3: memref<1x8x32xbf16, #tpu.memory_space<vmem>>, %arg4: memref<32x32xbf16, #tpu.memory_space<vmem>>, %arg5: memref<32x32xbf16, #tpu.memory_space<vmem>>, %arg6: memref<16x32xbf16, #tpu.memory_space<vmem>>, %arg7: memref<1x32xf32, #tpu.memory_space<vmem>>, %arg8: memref<4x8x32xbf16, #tpu.memory_space<vmem>>, %arg9: memref<1x32xf32, #tpu.memory_space<vmem>>, %arg10: memref<1x8x32xf32, #tpu.memory_space<vmem>>, %arg11: memref<4x8x8xbf16, #tpu.memory_space<vmem>>, %arg12: memref<4x8x8xbf16, #tpu.memory_space<vmem>>) attributes {dimension_semantics = [#tpu.dimension_semantics<parallel>, #tpu.dimension_semantics<arbitrary>], iteration_bounds = array<i64: 2, 1>, scalar_prefetch = 0 : i64, scratch_operands = 2 : i64, tpu.core_type = #tpu.core_type<tc>, window_params = [{transform_indices = @transform_0, window_bounds = array<i64: 1, 8, 16>}, {transform_indices = @transform_1, window_bounds = array<i64: 1, 8, 32>}, {pipeline_mode = #tpu.pipeline_mode<synchronous>, transform_indices = @transform_2, window_bounds = array<i64: 32, 32>}, {pipeline_mode = #tpu.pipeline_mode<synchronous>, transform_indices = @transform_3, window_bounds = array<i64: 32, 32>}, {pipeline_mode = #tpu.pipeline_mode<synchronous>, transform_indices = @transform_4, window_bounds = array<i64: 16, 32>}, {pipeline_mode = #tpu.pipeline_mode<synchronous>, transform_indices = @transform_5, window_bounds = array<i64: 1, 32>}, {pipeline_mode = #tpu.pipeline_mode<synchronous>, transform_indices = @transform_6, window_bounds = array<i64: 4, 8, 32>}, {pipeline_mode = #tpu.pipeline_mode<synchronous>, transform_indices = @transform_7, window_bounds = array<i64: 1, 32>}, {transform_indices = @transform_8, window_bounds = array<i64: 1, 8, 32>}]} {
    %c0_i32 = arith.constant 0 : i32
    %0 = arith.cmpi eq, %arg1, %c0_i32 : i32
    %1 = arith.extui %0 : i1 to i32
    %c0_i32_0 = arith.constant 0 : i32
    %2 = arith.cmpi ne, %1, %c0_i32_0 : i32
    scf.if %2 {
      %c0_27 = arith.constant 0 : index
      %c0_28 = arith.constant 0 : index
      %c0_29 = arith.constant 0 : index
      %43 = vector.load %arg3[%c0_27, %c0_28, %c0_29] : memref<1x8x32xbf16, #tpu.memory_space<vmem>>, vector<1x8x32xbf16>
      %44 = vector.shape_cast %43 : vector<1x8x32xbf16> to vector<8x32xbf16>
      %c0_30 = arith.constant 0 : index
      %c0_31 = arith.constant 0 : index
      %45 = vector.load %arg4[%c0_30, %c0_31] : memref<32x32xbf16, #tpu.memory_space<vmem>>, vector<32x32xbf16>
      %cst_32 = arith.constant dense<0.000000e+00> : vector<8x32xf32>
      %46 = tpu.matmul %44, %45, %cst_32 {dimension_numbers = #tpu.dot_dimension_numbers<[1], [0], [0], [1], [0, 0, 1, 1], [], []>} : vector<8x32xbf16>, vector<32x32xbf16>, vector<8x32xf32> -> vector<8x32xf32>
      %c0_33 = arith.constant 0 : index
      %c0_34 = arith.constant 0 : index
      %47 = vector.load %arg5[%c0_33, %c0_34] : memref<32x32xbf16, #tpu.memory_space<vmem>>, vector<32x32xbf16>
      %cst_35 = arith.constant dense<0.000000e+00> : vector<8x32xf32>
      %48 = tpu.matmul %44, %47, %cst_35 {dimension_numbers = #tpu.dot_dimension_numbers<[1], [0], [0], [1], [0, 0, 1, 1], [], []>} : vector<8x32xbf16>, vector<32x32xbf16>, vector<8x32xf32> -> vector<8x32xf32>
      %49 = vector.shape_cast %46 : vector<8x32xf32> to vector<8x4x8xf32>
      %50 = tpu.transpose %49, [1, 0, 2] : vector<8x4x8xf32> -> vector<4x8x8xf32>
      %51 = arith.truncf %50 : vector<4x8x8xf32> to vector<4x8x8xbf16>
      %c0_36 = arith.constant 0 : index
      %c0_37 = arith.constant 0 : index
      %c0_38 = arith.constant 0 : index
      %52 = vector.load %arg11[%c0_36, %c0_37, %c0_38] : memref<4x8x8xbf16, #tpu.memory_space<vmem>>, vector<4x8x8xbf16>
      tpu.vector_store %arg11[%c0_36, %c0_37, %c0_38], %51 {strides = array<i32>} : memref<4x8x8xbf16, #tpu.memory_space<vmem>>, vector<4x8x8xbf16>,
      %53 = vector.shape_cast %48 : vector<8x32xf32> to vector<8x4x8xf32>
      %54 = tpu.transpose %53, [1, 0, 2] : vector<8x4x8xf32> -> vector<4x8x8xf32>
      %55 = arith.truncf %54 : vector<4x8x8xf32> to vector<4x8x8xbf16>
      %c0_39 = arith.constant 0 : index
      %c0_40 = arith.constant 0 : index
      %c0_41 = arith.constant 0 : index
      %56 = vector.load %arg12[%c0_39, %c0_40, %c0_41] : memref<4x8x8xbf16, #tpu.memory_space<vmem>>, vector<4x8x8xbf16>
      tpu.vector_store %arg12[%c0_39, %c0_40, %c0_41], %55 {strides = array<i32>} : memref<4x8x8xbf16, #tpu.memory_space<vmem>>, vector<4x8x8xbf16>,
    } else {
    }
    %c0 = arith.constant 0 : index
    %c0_1 = arith.constant 0 : index
    %c0_2 = arith.constant 0 : index
    %3 = vector.load %arg2[%c0, %c0_1, %c0_2] : memref<1x8x16xbf16, #tpu.memory_space<vmem>>, vector<1x8x16xbf16>
    %4 = vector.shape_cast %3 : vector<1x8x16xbf16> to vector<8x16xbf16>
    %c0_3 = arith.constant 0 : index
    %c0_4 = arith.constant 0 : index
    %5 = vector.load %arg6[%c0_3, %c0_4] : memref<16x32xbf16, #tpu.memory_space<vmem>>, vector<16x32xbf16>
    %cst = arith.constant dense<0.000000e+00> : vector<8x32xf32>
    %6 = tpu.matmul %4, %5, %cst {dimension_numbers = #tpu.dot_dimension_numbers<[1], [0], [0], [1], [0, 0, 1, 1], [], []>} : vector<8x16xbf16>, vector<16x32xbf16>, vector<8x32xf32> -> vector<8x32xf32>
    %c0_5 = arith.constant 0 : index
    %c0_6 = arith.constant 0 : index
    %7 = vector.load %arg7[%c0_5, %c0_6] : memref<1x32xf32, #tpu.memory_space<vmem>>, vector<1x32xf32>
    %8 = vector.shape_cast %7 : vector<1x32xf32> to vector<32xf32>
    %9 = vector.shape_cast %8 : vector<32xf32> to vector<1x32xf32>
    %10 = vector.broadcast %9 : vector<1x32xf32> to vector<8x32xf32>
    %11 = arith.addf %6, %10 : vector<8x32xf32>
    %12 = vector.shape_cast %11 : vector<8x32xf32> to vector<8x4x8xf32>
    %13 = tpu.transpose %12, [1, 0, 2] : vector<8x4x8xf32> -> vector<4x8x8xf32>
    %14 = arith.truncf %13 : vector<4x8x8xf32> to vector<4x8x8xbf16>
    %c0_7 = arith.constant 0 : index
    %c0_8 = arith.constant 0 : index
    %c0_9 = arith.constant 0 : index
    %15 = vector.load %arg11[%c0_7, %c0_8, %c0_9] : memref<4x8x8xbf16, #tpu.memory_space<vmem>>, vector<4x8x8xbf16>
    "tpu.trace_start"() <{level = 10 : i32, message = "hqd,hkd->hqk"}> : () -> ()
    %cst_10 = arith.constant dense<0.000000e+00> : vector<4x8x8xf32>
    %16 = tpu.matmul %14, %15, %cst_10 {dimension_numbers = #tpu.dot_dimension_numbers<[2], [2], [1], [1], [0, 0, 0, 1, 1, 1], [0], [0]>} : vector<4x8x8xbf16>, vector<4x8x8xbf16>, vector<4x8x8xf32> -> vector<4x8x8xf32>
    "tpu.trace_stop"() : () -> ()
    %cst_11 = arith.constant dense<0xFF800000> : vector<4x8xf32>
    %17 = vector.multi_reduction <maximumf>, %16, %cst_11 [2] : vector<4x8x8xf32> to vector<4x8xf32>
    %18 = vector.shape_cast %17 : vector<4x8xf32> to vector<4x8x1xf32>
    %19 = vector.broadcast %18 : vector<4x8x1xf32> to vector<4x8x8xf32>
    %20 = arith.subf %16, %19 : vector<4x8x8xf32>
    %21 = arith.truncf %20 : vector<4x8x8xf32> to vector<4x8x8xbf16>
    %22 = math.exp %21 : vector<4x8x8xbf16>
    %23 = arith.extf %22 : vector<4x8x8xbf16> to vector<4x8x8xf32>
    %cst_12 = arith.constant dense<0.000000e+00> : vector<4x8xf32>
    %24 = vector.multi_reduction <add>, %23, %cst_12 [2] : vector<4x8x8xf32> to vector<4x8xf32>
    %25 = vector.shape_cast %24 : vector<4x8xf32> to vector<4x8x1xf32>
    %c0_13 = arith.constant 0 : index
    %c0_14 = arith.constant 0 : index
    %c0_15 = arith.constant 0 : index
    %26 = vector.load %arg12[%c0_13, %c0_14, %c0_15] : memref<4x8x8xbf16, #tpu.memory_space<vmem>>, vector<4x8x8xbf16>
    "tpu.trace_start"() <{level = 10 : i32, message = "hqk,hkd->hqd"}> : () -> ()
    %cst_16 = arith.constant dense<0.000000e+00> : vector<4x8x8xf32>
    %27 = tpu.matmul %22, %26, %cst_16 {dimension_numbers = #tpu.dot_dimension_numbers<[2], [1], [1], [2], [0, 0, 0, 1, 1, 2], [0], [0]>} : vector<4x8x8xbf16>, vector<4x8x8xbf16>, vector<4x8x8xf32> -> vector<4x8x8xf32>
    "tpu.trace_stop"() : () -> ()
    %28 = tpu.reciprocal %25 {approx = true} : vector<4x8x1xf32> -> vector<4x8x1xf32>
    %29 = vector.broadcast %28 : vector<4x8x1xf32> to vector<4x8x8xf32>
    %30 = arith.mulf %27, %29 : vector<4x8x8xf32>
    %31 = arith.truncf %30 : vector<4x8x8xf32> to vector<4x8x8xbf16>
    %c0_17 = arith.constant 0 : index
    %c0_18 = arith.constant 0 : index
    %c0_19 = arith.constant 0 : index
    %32 = vector.load %arg8[%c0_17, %c0_18, %c0_19] : memref<4x8x32xbf16, #tpu.memory_space<vmem>>, vector<4x8x32xbf16>
    "tpu.trace_start"() <{level = 10 : i32, message = "hqd,hdf->hqf"}> : () -> ()
    %cst_20 = arith.constant dense<0.000000e+00> : vector<4x8x32xf32>
    %33 = tpu.matmul %31, %32, %cst_20 {dimension_numbers = #tpu.dot_dimension_numbers<[2], [1], [1], [2], [0, 0, 0, 1, 1, 2], [0], [0]>} : vector<4x8x8xbf16>, vector<4x8x32xbf16>, vector<4x8x32xf32> -> vector<4x8x32xf32>
    "tpu.trace_stop"() : () -> ()
    %cst_21 = arith.constant dense<0.000000e+00> : vector<8x32xf32>
    %34 = vector.multi_reduction <add>, %33, %cst_21 [0] : vector<4x8x32xf32> to vector<8x32xf32>
    %c0_22 = arith.constant 0 : index
    %c0_23 = arith.constant 0 : index
    %35 = vector.load %arg9[%c0_22, %c0_23] : memref<1x32xf32, #tpu.memory_space<vmem>>, vector<1x32xf32>
    %36 = vector.shape_cast %35 : vector<1x32xf32> to vector<32xf32>
    %37 = vector.shape_cast %36 : vector<32xf32> to vector<1x32xf32>
    %38 = vector.broadcast %37 : vector<1x32xf32> to vector<8x32xf32>
    %39 = arith.addf %34, %38 : vector<8x32xf32>
    %c0_24 = arith.constant 0 : index
    %c0_25 = arith.constant 0 : index
    %c0_26 = arith.constant 0 : index
    %40 = vector.load %arg10[%c0_24, %c0_25, %c0_26] : memref<1x8x32xf32, #tpu.memory_space<vmem>>, vector<1x8x32xf32>
    %41 = vector.shape_cast %40 : vector<1x8x32xf32> to vector<8x32xf32>
    %42 = vector.shape_cast %39 : vector<8x32xf32> to vector<1x8x32xf32>
    tpu.vector_store %arg10[%c0_24, %c0_25, %c0_26], %42 {strides = array<i32>} : memref<1x8x32xf32, #tpu.memory_space<vmem>>, vector<1x8x32xf32>,
    return
  }
  func.func @transform_0(%arg0: i32, %arg1: i32) -> (i32, i32, i32) {
    %c0_i32 = arith.constant 0 : i32
    %c0_i32_0 = arith.constant 0 : i32
    return %arg0, %arg1, %c0_i32 : i32, i32, i32
  }
  func.func @transform_1(%arg0: i32, %arg1: i32) -> (i32, i32, i32) {
    %c0_i32 = arith.constant 0 : i32
    %c0_i32_0 = arith.constant 0 : i32
    %c0_i32_1 = arith.constant 0 : i32
    return %arg0, %c0_i32, %c0_i32_0 : i32, i32, i32
  }
  func.func @transform_2(%arg0: i32, %arg1: i32) -> (i32, i32) {
    %c0_i32 = arith.constant 0 : i32
    %c0_i32_0 = arith.constant 0 : i32
    %c0_i32_1 = arith.constant 0 : i32
    return %c0_i32, %c0_i32_0 : i32, i32
  }
  func.func @transform_3(%arg0: i32, %arg1: i32) -> (i32, i32) {
    %c0_i32 = arith.constant 0 : i32
    %c0_i32_0 = arith.constant 0 : i32
    %c0_i32_1 = arith.constant 0 : i32
    return %c0_i32, %c0_i32_0 : i32, i32
  }
  func.func @transform_4(%arg0: i32, %arg1: i32) -> (i32, i32) {
    %c0_i32 = arith.constant 0 : i32
    %c0_i32_0 = arith.constant 0 : i32
    %c0_i32_1 = arith.constant 0 : i32
    return %c0_i32, %c0_i32_0 : i32, i32
  }
  func.func @transform_5(%arg0: i32, %arg1: i32) -> (i32, i32) {
    %c0_i32 = arith.constant 0 : i32
    %c0_i32_0 = arith.constant 0 : i32
    %c0_i32_1 = arith.constant 0 : i32
    return %c0_i32, %c0_i32_0 : i32, i32
  }
  func.func @transform_6(%arg0: i32, %arg1: i32) -> (i32, i32, i32) {
    %c0_i32 = arith.constant 0 : i32
    %c0_i32_0 = arith.constant 0 : i32
    %c0_i32_1 = arith.constant 0 : i32
    %c0_i32_2 = arith.constant 0 : i32
    return %c0_i32, %c0_i32_0, %c0_i32_1 : i32, i32, i32
  }
  func.func @transform_7(%arg0: i32, %arg1: i32) -> (i32, i32) {
    %c0_i32 = arith.constant 0 : i32
    %c0_i32_0 = arith.constant 0 : i32
    %c0_i32_1 = arith.constant 0 : i32
    return %c0_i32, %c0_i32_0 : i32, i32
  }
  func.func @transform_8(%arg0: i32, %arg1: i32) -> (i32, i32, i32) {
    %c0_i32 = arith.constant 0 : i32
    %c0_i32_0 = arith.constant 0 : i32
    return %arg0, %arg1, %c0_i32 : i32, i32, i32
  }
}

</mosaic_0001>

<bundles_post_ra>
// kernel: tpu_custom_call.1
= control target key start
LH: loop header
LB: loop body
LE: loop exit
PB: predicated region body
PF: predicated region fallthrough
CT: control target
= control target key end

     0   :  { %s2950_s0 = inlined_call_operand.hbm [shape: bf16[2,8,16], index: 0, kind: input, shape index: {}]   ;;  %s2951_s1 = inlined_call_operand.hbm [shape: bf16[2,8,32], index: 1, kind: input, shape index: {}]   ;;  %s2952_s2 = inlined_call_operand.hbm [shape: bf16[32,32], index: 2, kind: input, shape index: {}]   ;;  %s2953_s3 = inlined_call_operand.hbm [shape: bf16[32,32], index: 3, kind: input, shape index: {}]   ;;  %s2954_s4 = inlined_call_operand.hbm [shape: bf16[16,32], index: 4, kind: input, shape index: {}]   ;;  %s2955_s5 = inlined_call_operand.vmem [shape: f32[1,32], index: 5, kind: input, shape index: {}]   ;;  %s2956_s6 = inlined_call_operand.vmem [shape: bf16[4,8,32], index: 6, kind: input, shape index: {}]   ;;  %s2957_s7 = inlined_call_operand.vmem [shape: f32[1,32], index: 7, kind: input, shape index: {}]   ;;  %s2958_s8 = inlined_call_operand.hbm [shape: f32[2,8,32], index: 8, kind: output, shape index: {}]  }
   0x1   :  { %2966 = sst [smem:[#allocation21_spill]] %s2952_s2 }
   0x2   :  { %2967 = sst [smem:[#allocation22_spill]] %s2953_s3 }
   0x3   :  { %2968 = sst [smem:[#allocation23_spill]] %s2954_s4 }
   0x4   :  { %2969 = sst [smem:[#allocation24_spill]] %s2957_s7 }
   0x5   :  { %2970 = sst [smem:[#allocation25_spill]] %s2958_s8 }
   0x6   :  { %13 = vsyncpa [#allocation5], 0 }
   0x7   :  { %15 = vsyncpa [#allocation5 + $0x1], 0 }
   0x8   :  { %16 = vsyncpa [#allocation8], 0 }
   0x9   :  { %18 = vsyncpa [#allocation8 + $0x1], 0 }
   0xa   :  { %19 = vsyncpa [#allocation11], 0 }
   0xb   :  { %20 = vsyncpa [#allocation6], 0 }
   0xc   :  { %22 = vsyncpa [#allocation6 + $0x1], 0  ;;  %s2452_s27 = smov 0   ;;  %s2454_s28 = smov 0  }
   0xd   :  { %s2456_s29 = smov 0   ;;  %s2458_s30 = smov 0  }
   0xe   :  { %s2460_s9 = smov 0   ;;  %s2462_s10 = smov 0  }
   0xf LB: > { %2971 = sst [smem:[#allocation19_spill]] %s2370_s27  ;;  %s2483_s11 = sadd.s32 4294967295, %s2390_s10   ;;  %s2390_s10 = sphi %s2462_s10, %s28_s10   ;;  %s2386_s9 = sphi %s2460_s9, %s3002_s9   ;;  %s2382_s30 = sphi %s2458_s30, %s3001_s30   ;;  %s2378_s29 = sphi %s2456_s29, %s3000_s29   ;;  %s2374_s28 = sphi %s2454_s28, %s2999_s28   ;;  %s2370_s27 = sphi %s2452_s27, %s2998_s27  }
  0x10   : > { %s1849_s12 = sadd.s32 4294967294, %s2390_s10   ;;  %p62_p0 = scmp.ne.s32.totalorder %s2374_s28, %s2370_s27 }
  0x11   : > { %p2959_p1 = scmp.eq.s32.totalorder %s2483_s11, 0  ;;  %p246_p3 = scmp.eq.s32.totalorder %s1849_s12, 1 }
  0x12   : > { %p1850_p5 = scmp.ge.s32.totalorder %s2390_s10, 1  ;;  %p253_p7 = scmp.lt.s32.totalorder %s2390_s10, 3 }
  0x13   : > { %p2492_p4 = por %p2959_p1, %p62_p0  ;;  %p2497_p6 = por %p246_p3, %p62_p0 }
  0x14   : > { %p2502_p8 = pnand %p1850_p5, %p253_p7  ;;  %s2392_s16 = smov [#allocation9]  }
  0x15   : > { %s2972_s13 = scalar_select %p2492_p4, 1, 0 }
  0x16   : > { %s2973_s14 = scalar_select %p2497_p6, 1, 0 }
  0x17   : > { %s2975_s15 = scalar_select %p2502_p8, 1, 0 }
  0x18   : > { %2974 = sst [smem:[#allocation20_spill]] %s2973_s14  ;;  %s265_s17 = sshll.u32 %s2392_s16, 4  ;;  %s2506_s17 = int_to_ptr.vmem [resolvable:$true] %s265_s17 }
  0x19   : > { %p2042_p9 = pneg %p2502_p8  ;;  %s2393_s19 = smov [#allocation10]  }
  0x1a   : > { %s278_s20 = sshll.u32 %s2393_s19, 4  ;;  %s2394_s21 = smov [#allocation12]   ;;  %s2517_s20 = int_to_ptr.vmem [resolvable:$true] %s278_s20 }
  0x1b   : > { %p2513_p11 = pnand %p2042_p9, %p2959_p1  ;;  %s2519_s22 = sshll.u32 %s2394_s21, 4  ;;  %s292_s22 = int_to_ptr.vmem [resolvable:$true] %s2519_s22 }
  0x1c   : > { %s2977_s2 = sld [smem:[#allocation21_spill]] }
  0x1d   : > { %p2529_p13 = pneg %p2513_p11 }
  0x22   : > { %s2152_s25 = scalar_lea.hbm %s2977_s2, 256 }
  0x23   : > { %p2153_p12 = scmp.ne.s32.totalorder %s2977_s2, %s2152_s25  ;;  %p2159_p5 = scmp.lt.u32.totalorder %s2152_s25, %s2977_s2 }
  0x25   : > { %p2155_p0 = pnand %p2529_p13, %p2153_p12 }
  0x27   : > { %p2156_p3 = pneg %p2155_p0 }
  0x29   : > { %p2161_p7 = pnand %p2159_p5, %p2156_p3 }
  0x2b   : > { %2164 = shalt.err (!%p2161_p7)
}
  0x2c   : > { %s2165_s23 = scalar_lea.vmem %s2506_s17, 256  ;;  %p2173_p2 = scmp.lt.s32.totalorder %s2506_s17, %s2506_s17 }
  0x2d   : > { %p2166_p9 = scmp.ne.s32.totalorder %s2506_s17, %s2165_s23  ;;  %p2174_p6 = scmp.lt.s32.totalorder %s2165_s23, %s2165_s23 }
  0x2f   : > { %p2168_p10 = pnand %p2166_p9, %p2529_p13  ;;  %p2175_p12 = por %p2174_p6, %p2173_p2 }
  0x31   : > { %p2169_p1 = pneg %p2168_p10 }
  0x33   : > { %p2176_p0 = pnand %p2175_p12, %p2169_p1 }
  0x35   : > { %2179 = shalt.err (!%p2176_p0)
}
  0x36   : > { %s2395_s24 = smov 64   ;;  %s2396_s25 = smov 4  }
  0x37   : > { %2045 = dma.hbm_to_vmem [thread:$0]  (!%p2513_p11), %s2977_s2, 256, %s2506_s17, [#allocation8], %s2395_s24, %s2395_s24, %s2396_s25  }
  0x38   : > { %s2979_s3 = sld [smem:[#allocation22_spill]] }
  0x3e   : > { %s2180_s23 = scalar_lea.hbm %s2979_s3, 256 }
  0x3f   : > { %p2181_p1 = scmp.ne.s32.totalorder %s2979_s3, %s2180_s23  ;;  %p2187_p10 = scmp.lt.u32.totalorder %s2180_s23, %s2979_s3 }
  0x41   : > { %p2183_p2 = pnand %p2181_p1, %p2529_p13 }
  0x43   : > { %p2184_p6 = pneg %p2183_p2 }
  0x45   : > { %p2189_p3 = pnand %p2187_p10, %p2184_p6 }
  0x47   : > { %2192 = shalt.err (!%p2189_p3)
}
  0x48   : > { %s2193_s17 = scalar_lea.vmem %s2517_s20, 256  ;;  %p2201_p12 = scmp.lt.s32.totalorder %s2517_s20, %s2517_s20 }
  0x49   : > { %p2194_p5 = scmp.ne.s32.totalorder %s2517_s20, %s2193_s17  ;;  %p2202_p0 = scmp.lt.s32.totalorder %s2193_s17, %s2193_s17 }
  0x4b   : > { %p2196_p7 = pnand %p2194_p5, %p2529_p13  ;;  %p2203_p1 = por %p2202_p0, %p2201_p12 }
  0x4d   : > { %p2197_p9 = pneg %p2196_p7 }
  0x4f   : > { %p2204_p2 = pnand %p2203_p1, %p2197_p9 }
  0x51   : > { %2207 = shalt.err (!%p2204_p2)
}
  0x52   : > { %2048 = dma.hbm_to_vmem [thread:$0]  (!%p2513_p11), %s2979_s3, 256, %s2517_s20, [#allocation11], %s2395_s24, %s2395_s24, %s2396_s25  }
  0x53   : > { %s2980_s4 = sld [smem:[#allocation23_spill]] }
  0x59   : > { %s2208_s26 = scalar_lea.hbm %s2980_s4, 128 }
  0x5a   : > { %p2209_p6 = scmp.ne.s32.totalorder %s2980_s4, %s2208_s26  ;;  %p2215_p5 = scmp.lt.u32.totalorder %s2208_s26, %s2980_s4 }
  0x5c   : > { %p2211_p10 = pnand %p2209_p6, %p2529_p13 }
  0x5e   : > { %p2212_p3 = pneg %p2211_p10 }
  0x60   : > { %p2217_p7 = pnand %p2215_p5, %p2212_p3 }
  0x62   : > { %2220 = shalt.err (!%p2217_p7)
}
  0x63   : > { %s2221_s17 = scalar_lea.vmem %s292_s22, 128  ;;  %p2229_p1 = scmp.lt.s32.totalorder %s292_s22, %s292_s22 }
  0x64   : > { %p2222_p9 = scmp.ne.s32.totalorder %s292_s22, %s2221_s17  ;;  %p2230_p2 = scmp.lt.s32.totalorder %s2221_s17, %s2221_s17 }
  0x66   : > { %p2224_p12 = pnand %p2222_p9, %p2529_p13  ;;  %p2231_p4 = por %p2230_p2, %p2229_p1 }
  0x68   : > { %p2225_p0 = pneg %p2224_p12 }
  0x6a   : > { %p2232_p8 = pnand %p2231_p4, %p2225_p0 }
  0x6c   : > { %2235 = shalt.err (!%p2232_p8)
}
  0x6d   : > { %2051 = dma.hbm_to_vmem [thread:$0]  (!%p2513_p11), %s2980_s4, 128, %s292_s22, [#allocation11], %s2395_s24, %s2395_s24, %s2396_s25  }
  0x6e   : > { %s49_s16 = sadd.s32 1, %s2378_s29  ;;  %s40_s18 = sadd.s32 1, %s2386_s9 }
  0x6f   : > { %p56_p4 = scmp.ne.s32.totalorder %s2378_s29, %s2374_s28  ;;  %p42_p8 = scmp.ge.s32.totalorder %s40_s18, 2 }
  0x70   : > { %p57_p13 = scmp.eq.s32.totalorder %s2390_s10, 0  ;;  %p2981_p6 = scmp.eq.s32.totalorder %s2483_s11, 1 }
  0x71   : > { %p2066_p3 = scmp.lt.s32.totalorder %s2390_s10, 2  ;;  %s3004_s18 = smov (%p42_p8, %s40_s18), 0 }
  0x72   : > { %p2608_p10 = por %p2981_p6, %p56_p4  ;;  %p58_p5 = por %p57_p13, %p56_p4 }
  0x73   : > { %s314_s27 = sand.u32 1, %s2378_s29   ;;  %s44_s14 = ssub.s32 %s2386_s9, %s3004_s18 }
  0x74   : > { %s2982_s8 = scalar_select %p2608_p10, 1, 0 }
  0x75   : > { %p47_p11 = scmp.eq.s32.totalorder %s44_s14, 0  ;;  %s2618_s22 = sshll.u32 %s314_s27, 2 }
  0x76   : > { %s1856_s24 = sshll.u32 %s2386_s9, 6  ;;  %s318_s21 = scalar_lea.vmem [#allocation4], %s2618_s22 }
  0x77   : > { %s2622_s25 = scalar_select %p47_p11, %s2378_s29, %s49_s16  }
  0x78   : > { %s2627_s19 = scalar_lea.hbm %s2950_s0, %s1856_s24  ;;  %s326_s23 = sshll.u32 %s318_s21, 4  ;;  %s2630_s23 = int_to_ptr.vmem [resolvable:$true] %s326_s23 }
  0x79   : > { %p2634_p7 = pnand %p2066_p3, %p58_p5  ;;  %s2641_s16 = scalar_lea.hbm %s2951_s1, %s1856_s24 }
  0x7a   : > { %s333_s14 = sand.u32 1, %s2390_s10   ;;  %s315_s26 = scalar_lea.sflag [#allocation5], %s314_s27 }
  0x7b   : > { %s2236_s12 = scalar_lea.hbm %s2627_s19, 64  ;;  %p2238_p12 = pneg %p2634_p7 }
  0x7c   : > { %p2237_p9 = scmp.ne.s32.totalorder %s2627_s19, %s2236_s12  ;;  %s2241_s3 = scalar_lea.hbm %s2950_s0, 128 }
  0x7d   : > { %p2242_p2 = scmp.lt.u32.totalorder %s2627_s19, %s2950_s0  ;;  %p2243_p4 = scmp.lt.u32.totalorder %s2241_s3, %s2236_s12 }
  0x7e   : > { %p2239_p0 = pnand %p2238_p12, %p2237_p9  ;;  %p2245_p13 = scmp.lt.u32.totalorder %s2236_s12, %s2627_s19 }
  0x7f   : > { %p2244_p8 = por %p2243_p4, %p2242_p2 }
  0x80   : > { %p2240_p1 = pneg %p2239_p0 }
  0x81   : > { %p2246_p6 = por %p2245_p13, %p2244_p8 }
  0x83   : > { %p2247_p3 = pnand %p2246_p6, %p2240_p1 }
  0x85   : > { %2250 = shalt.err (!%p2247_p3)
}
  0x86   : > { %s2251_s27 = scalar_lea.vmem %s2630_s23, 64  ;;  %s2397_s2 = smov [#allocation4]  }
  0x87   : > { %p2252_p5 = scmp.ne.s32.totalorder %s2630_s23, %s2251_s27  ;;  %s2256_s24 = sshll.u32 %s2397_s2, 4  ;;  %s2257_s24 = int_to_ptr.vmem [resolvable:$false] %s2256_s24 }
  0x88   : > { %s2258_s4 = scalar_lea.vmem %s2257_s24, 128  ;;  %p2259_p0 = scmp.lt.s32.totalorder %s2630_s23, %s2257_s24 }
  0x89   : > { %p2254_p11 = pnand %p2252_p5, %p2238_p12  ;;  %p2260_p2 = scmp.lt.s32.totalorder %s2258_s4, %s2251_s27 }
  0x8b   : > { %p2255_p9 = pneg %p2254_p11  ;;  %p2261_p4 = por %p2260_p2, %p2259_p0 }
  0x8d   : > { %p2262_p8 = pnand %p2261_p4, %p2255_p9 }
  0x8f   : > { %2265 = shalt.err (!%p2262_p8)
}
  0x90   : > { %2055 = dma.hbm_to_vmem [thread:$0]  (!%p2634_p7), %s2627_s19, 64, %s2630_s23, %s315_s26  }
  0x91   : > { %s337_s3 = scalar_lea.vmem [#allocation7], %s2618_s22  ;;  %s334_s12 = scalar_lea.sflag [#allocation8], %s333_s14 }
  0x92   : > { %s344_s7 = sshll.u32 %s337_s3, 4  ;;  %s2266_s21 = scalar_lea.hbm %s2641_s16, 64  ;;  %s345_s7 = int_to_ptr.vmem [resolvable:$true] %s344_s7 }
  0x93   : > { %p2267_p1 = scmp.ne.s32.totalorder %s2641_s16, %s2266_s21  ;;  %s2271_s2 = scalar_lea.hbm %s2951_s1, 128 }
  0x94   : > { %p2272_p3 = scmp.lt.u32.totalorder %s2641_s16, %s2951_s1  ;;  %p2273_p5 = scmp.lt.u32.totalorder %s2271_s2, %s2266_s21 }
  0x95   : > { %p2269_p13 = pnand %p2267_p1, %p2238_p12  ;;  %p2275_p9 = scmp.lt.u32.totalorder %s2266_s21, %s2641_s16 }
  0x96   : > { %p2274_p11 = por %p2273_p5, %p2272_p3 }
  0x97   : > { %p2270_p6 = pneg %p2269_p13 }
  0x98   : > { %p2276_p0 = por %p2275_p9, %p2274_p11 }
  0x9a   : > { %p2277_p2 = pnand %p2276_p0, %p2270_p6 }
  0x9c   : > { %2280 = shalt.err (!%p2277_p2)
}
  0x9d   : > { %s2281_s22 = scalar_lea.vmem %s345_s7, 64  ;;  %s2398_s19 = smov [#allocation7]  }
  0x9e   : > { %p2282_p4 = scmp.ne.s32.totalorder %s345_s7, %s2281_s22  ;;  %s2286_s23 = sshll.u32 %s2398_s19, 4  ;;  %s2287_s23 = int_to_ptr.vmem [resolvable:$false] %s2286_s23 }
  0x9f   : > { %s2288_s14 = scalar_lea.vmem %s2287_s23, 128  ;;  %p2289_p13 = scmp.lt.s32.totalorder %s345_s7, %s2287_s23 }
  0xa0   : > { %p2284_p8 = pnand %p2282_p4, %p2238_p12  ;;  %p2290_p10 = scmp.lt.s32.totalorder %s2288_s14, %s2281_s22 }
  0xa2   : > { %p2285_p1 = pneg %p2284_p8  ;;  %p2291_p3 = por %p2290_p10, %p2289_p13 }
  0xa4   : > { %p2292_p5 = pnand %p2291_p3, %p2285_p1 }
  0xa6   : > { %2295 = shalt.err (!%p2292_p5)
}
  0xa7   : > { %2058 = dma.hbm_to_vmem [thread:$0]  (!%p2634_p7), %s2641_s16, 64, %s345_s7, %s334_s12  }
  0xa8   : > { %p2984_p6 = scmp.ne.s32.totalorder %s2975_s15, 0 }
  0xa9   : > { %s2694_s26 = sand.u32 (!%p2984_p6), 1, %s2374_s28   ;;  %p2985_p10 = scmp.ne.s32.totalorder (!%p2984_p6), %s2972_s13, 0 }
  0xaa   : > { %353 = sbr.rel (%p2984_p6) target bundleno = 1394 (0x572), region = 52  ;;  %s1860_s3 = sshll.u32 (!%p2984_p6), %s2694_s26, 2 }
  0xab   : > { %s356_s21 = scalar_lea.sflag (!%p2984_p6), [#allocation5], %s2694_s26  ;;  %s2698_s20 = scalar_lea.vmem (!%p2984_p6), [#allocation4], %s1860_s3 }
  0xb1   : > { %2349 = dma.done.wait (%p2985_p10), %s356_s21, 64  }
  0xb2   : > { %2351 = vsyncadd (%p2985_p10), %s356_s21, 4294967232  ;;  %s364_s17 = sand.u32 1, %s2483_s11   ;;  %s368_s16 = scalar_lea.vmem [#allocation7], %s1860_s3 }
  0xb3   : > { %s365_s15 = scalar_lea.sflag [#allocation8], %s364_s17 }
  0xb4   : > { %2353 = dma.done.wait (%p2985_p10), %s365_s15, 64  }
  0xb5   : > { %2355 = vsyncadd (%p2985_p10), %s365_s15, 4294967232  ;;  %p2986_p7 = scmp.eq.s32.totalorder %s2483_s11, 0 }
  0xb7   : > { %2357 = dma.done.wait (%p2986_p7), [#allocation8], 256   ;;  %p2987_p12 = pmov %p2986_p7 }
  0xb8   : > { %p2988_p11 = pmov %p2986_p7 }
  0xb9   : > { %2359 = vsyncadd (%p2987_p12), [#allocation8], 4294967040 }
  0xba   : > { %2361 = dma.done.wait (%p2988_p11), [#allocation11], 384   ;;  %p2989_p9 = pmov %p2986_p7 }
  0xbb   : > { %v2399_v0 = vmov 0.0   ;;  %vm2400_vm0 = vmmov 0   ;;  %v2131_v1 = vld [vmem:[#allocation9] sm:$0xff]   ;;  %v2132_v2 = vld [vmem:[#allocation9 + $0x8] sm:$0xff]   ;;  %v2134_v3 = vld [vmem:[#allocation10] sm:$0xff]   ;;  %vm440_vm1 = vcmask 261120   ;;  %v555_v24 = vlaneseq }
  0xbc   : > { %2363 = vsyncadd (%p2989_p9), [#allocation11], 4294966912  ;;  %1930 = vmatprep.subr.bf16.mxu0 %v2399_v0  ;;  %1934 = vmatprep.mubr.msk.bf16.mxu0 %vm2400_vm0, %v2399_v0  ;;  %v423_v4 = vld [vmem:[%s368_s16] sm:$0xf]  ;;  %v2133_v5 = vld [vmem:[#allocation12] sm:$0xff]   ;;  %vm865_vm2 = vcmask 130048  }
  0xbd   : > { %1938 = vmatprep.subr.bf16.mxu1 %v2399_v0  ;;  %1942 = vmatprep.mubr.msk.bf16.mxu1 %vm2400_vm0, %v2399_v0  ;;  %v849_v6 = vld [vmem:[%s2698_s20] sm:$0xf]  ;;  %v2135_v7 = vld [vmem:[#allocation10 + $0x8] sm:$0xff]   ;;  %s2401_s11 = smov 104   ;;  %s2402_s13 = smov 120   ;;  %v556_v28 = vshrl.u32 %v555_v24, 7 }
  0xbe   : > { %1931 = vmatpush3.bf16.msra.mxu0 %v2131_v1  ;;  %1939 = vmatpush3.bf16.msra.mxu1 %v2134_v3  ;;  %s2403_s7 = smov 112   ;;  %v1876_v12 = vld [vmem:[%s2955_s5] ss:$0 sm:$0xff]  ;;  %v2404_v22 = vmov 1983009808   ;;  %vm690_vm3 = vcmask 60416  }
  0xbf   : > { %1932 = vmatprep.subr.bf16.mxu0 %v2399_v0  ;;  %1940 = vmatprep.subr.bf16.mxu1 %v2399_v0  ;;  %v553_v23 = vunpack.c.l.s4 %v2404_v22  ;;  %v2405_v25 = vmov 1934713408   ;;  %vm1063_vm4 = vcmask 64512   ;;  %vm1303_vm5 = vcmask 1043456   ;;  %s1865_s21 = sshll.u32 %s2694_s26, 3  ;;  %s2990_s15 = sld [smem:[#allocation24_spill]] }
  0xc0   : > { %v585_v26 = vunpack.c.l.s4 %v2405_v25  ;;  %s1895_s16 = sshll.u32 %s2382_s30, 7  ;;  %s2991_s27 = sld [smem:[#allocation25_spill]] }
  0xc1   : > { %v554_v27 = vunpack.c.0.s8 %v553_v23  ;;  %s1703_s4 = scalar_lea.sflag [#allocation6], %s2694_s26  ;;  %p2993_p2 = scmp.ne.s32.totalorder %s2982_s8, 0 }
  0xc2   : > { %1933 = vmatpush3.bf16.msra.mxu0 %v2132_v2  ;;  %1941 = vmatpush3.bf16.msra.mxu1 %v2135_v7  ;;  %v586_v31 = vunpack.c.0.s8 %v585_v26  ;;  %s2406_s30 = smov [#allocation13]  }
  0xc3   : > { %1946 = vmatprep.subr.bf16.mxu0 %v2399_v0  ;;  %1952 = vmatprep.subr.bf16.mxu1 %v2399_v0  ;;  %v2750_v32 = vsub.s32 %v554_v27, %v556_v28  ;;  %s2300_s19 = sshll.u32 %s2406_s30, 4  ;;  %s2301_s19 = int_to_ptr.vmem [resolvable:$false] %s2300_s19 }
  0xc4   : > { %v2752_v38 = vsub.s32 %v586_v31, %v556_v28  ;;  %s2302_s23 = scalar_lea.vmem %s2301_s19, 256 }
  0xc5   : > { %1935 = vmatmul.mubr.msk.bf16.vlgmr.msra.gmra.mrb[0].mxu0 %vm440_vm1, %v423_v4  ;;  %1943 = vmatmul.mubr.msk.bf16.vlgmr.msra.gmra.mrb[0].mxu1 %vm440_vm1, %v423_v4 }
  0xc6   : > { %1947 = vmatpush3.bf16.msra.mxu0 %v2133_v5  ;;  %1948 = vmatprep.mubr.msk.bf16.mxu0 %vm2400_vm0, %v2399_v0  ;;  %s2992_s2 = smov %s2991_s27  ;;  %s2900_s24 = scalar_lea.hbm %s2991_s27, %s1895_s16 }
  0xc7   : > { %1958 = vmatprep.subr.bf16.mxu0 %v2399_v0  ;;  %1954 = vmatprep.mubr.msk.bf16.mxu1 %vm2400_vm0, %v2399_v0 }
  0xcd   : > { %1949 = vmatmul.mubr.msk.bf16.vlgmr.msra.gmra.mrb[4].mxu0 %vm865_vm2, %v849_v6 }
  0xce   : > { %1960 = vmatprep.mubr.msk.bf16.mxu0 %vm2400_vm0, %v2399_v0 }
 0x198   : > { %v478_v8 = vpop.f32.mrb[0].mxu0  ;;  %v2745_v18 = vpop.f32.mrb[0].mxu1 }
 0x199   : > { %547 = vrot.lane.b32.xlu1 %v478_v8, %s2401_s11  ;;  %541 = vrot.lane.b32.xlu0 %v478_v8, %s2402_s13  ;;  %v1936_v9 = vpop.f32.mrb[1].mxu0  ;;  %v1944_v19 = vpop.f32.mrb[1].mxu1 }
 0x19a   : > { %v481_v10 = vpop.f32.mrb[2].mxu0  ;;  %v537_v20 = vpop.f32.mrb[2].mxu1 }
 0x19b   : > { %v1937_v11 = vpop.f32.mrb[3].mxu0  ;;  %v1945_v21 = vpop.f32.mrb[3].mxu1 }
 0x19d   : > { %544 = vrot.lane.b32.xlu0 %v478_v8, %s2403_s7 }
 0x1a0   : > { %v903_v13 = vpop.f32.mrb[4].mxu0 }
 0x1a1   : > { %v2740_v14 = vadd.f32 %v1876_v12, %v903_v13  ;;  %v1950_v15 = vpop.f32.mrb[5].mxu0 }
 0x1a2   : > { %v906_v16 = vpop.f32.mrb[6].mxu0 }
 0x1a3   : > { %913 = vrot.lane.b32.xlu0 %v2740_v14, %s2403_s7  ;;  %910 = vrot.lane.b32.xlu1 %v2740_v14, %s2402_s13  ;;  %v1951_v17 = vpop.f32.mrb[7].mxu0 }
 0x1a7   : > { %916 = vrot.lane.b32.xlu1 %v2740_v14, %s2401_s11  ;;  %696 = vrot.lane.b32.xlu0 %v2745_v18, %s2402_s13 }
 0x1ab   : > { %699 = vrot.lane.b32.xlu1 %v2745_v18, %s2403_s7  ;;  %702 = vrot.lane.b32.xlu0 %v2745_v18, %s2401_s11  ;;  %s417_s11 = scalar_lea.vmem [#allocation13], %s1865_s21 }
 0x1ac   : > { %s1717_s13 = sshll.u32 %s417_s11, 4  ;;  %s2902_s13 = int_to_ptr.vmem [resolvable:$true] %s1717_s13 }
 0x1ad   : > { %s2296_s22 = scalar_lea.vmem %s2902_s13, 128  ;;  %p2303_p1 = scmp.lt.s32.totalorder %s2902_s13, %s2301_s19 }
 0x1ae   : > { %p2297_p0 = scmp.ne.s32.totalorder %s2902_s13, %s2296_s22  ;;  %p2304_p13 = scmp.lt.s32.totalorder %s2302_s23, %s2296_s22 }
 0x1b0   : > { %p2298_p4 = pnand %p2297_p0, %p2993_p2  ;;  %p2305_p3 = por %p2304_p13, %p2303_p1 }
 0x1b2   : > { %p2299_p8 = pneg %p2298_p4 }
 0x1b4   : > { %p2306_p5 = pnand %p2305_p3, %p2299_p8 }
 0x20b   : > { %v548_v29 = vpop.permute.xlu1 %547  ;;  %v542_v30 = vpop.permute.xlu0 %541 }
 0x20c   : > { %v566_v33 = vcombine.low %v542_v30, %v548_v29  ;;  %v567_v34 = vcombine.high %v542_v30, %v548_v29 }
 0x20e   : > { %v574_v39 = vrot.slane %v566_v33, %v2750_v32  ;;  %v581_v40 = vrot.slane %v567_v34, %v2750_v32 }
 0x20f   : > { %v545_v35 = vpop.permute.xlu0 %544 }
 0x210   : > { %v550_v36 = vcombine.low %v478_v8, %v545_v35  ;;  %v551_v37 = vcombine.high %v478_v8, %v545_v35 }
 0x212   : > { %v558_v41 = vrot.slane %v550_v36, %v2750_v32  ;;  %v565_v42 = vrot.slane %v551_v37, %v2750_v32 }
 0x214   : > { %v582_v43 = vcombine.low %v558_v41, %v574_v39  ;;  %v583_v44 = vcombine.high %v558_v41, %v574_v39  ;;  %v598_v45 = vcombine.low %v565_v42, %v581_v40  ;;  %v599_v46 = vcombine.high %v565_v42, %v581_v40 }
 0x215   : > { %v911_v47 = vpop.permute.xlu1 %910  ;;  %v914_v52 = vpop.permute.xlu0 %913 }
 0x216   : > { %v590_v48 = vrot.slane %v582_v43, %v2752_v38  ;;  %v597_v49 = vrot.slane %v583_v44, %v2752_v38  ;;  %v606_v50 = vrot.slane %v598_v45, %v2752_v38  ;;  %v613_v51 = vrot.slane %v599_v46, %v2752_v38 }
 0x217   : > { %v919_v57 = vcombine.low %v2740_v14, %v914_v52  ;;  %v920_v58 = vcombine.high %v2740_v14, %v914_v52 }
 0x218   : > { %v618_v53 = vcombine.low %v590_v48, %v597_v49  ;;  %v1872_v54 = vcombine.high %v590_v48, %v597_v49  ;;  %v634_v55 = vcombine.low %v606_v50, %v613_v51  ;;  %v1873_v56 = vcombine.high %v606_v50, %v613_v51 }
 0x219   : > { %v917_v59 = vpop.permute.xlu1 %916  ;;  %v927_v7 = vrot.slane %v919_v57, %v2750_v32  ;;  %v934_v8 = vrot.slane %v920_v58, %v2750_v32 }
 0x21a   : > { %v625_v60 = vrot.slane %v618_v53, %v2750_v32  ;;  %v633_v61 = vrot.slane %v1872_v54, %v2750_v32  ;;  %v641_v62 = vrot.slane %v634_v55, %v2750_v32  ;;  %v649_v63 = vrot.slane %v1873_v56, %v2750_v32 }
 0x21b   : > { %v935_v1 = vcombine.low %v911_v47, %v917_v59  ;;  %v936_v2 = vcombine.high %v911_v47, %v917_v59 }
 0x21c   : > { %v650_v3 = vcombine.low %v625_v60, %v633_v61  ;;  %v651_v4 = vcombine.high %v625_v60, %v633_v61  ;;  %v666_v5 = vcombine.low %v641_v62, %v649_v63  ;;  %v667_v6 = vcombine.high %v641_v62, %v649_v63 }
 0x21d   : > { %v943_v9 = vrot.slane %v935_v1, %v2750_v32  ;;  %v950_v10 = vrot.slane %v936_v2, %v2750_v32 }
 0x21e   : > { %v658_v11 = vrot.slane %v650_v3, %v2752_v38  ;;  %v665_v12 = vrot.slane %v651_v4, %v2752_v38  ;;  %v674_v13 = vrot.slane %v666_v5, %v2752_v38  ;;  %v681_v14 = vrot.slane %v667_v6, %v2752_v38  ;;  %v697_v3 = vpop.permute.xlu0 %696  ;;  %v700_v4 = vpop.permute.xlu1 %699 }
 0x21f   : > { %v951_v15 = vcombine.low %v927_v7, %v943_v9  ;;  %v952_v16 = vcombine.high %v927_v7, %v943_v9  ;;  %v967_v17 = vcombine.low %v934_v8, %v950_v10  ;;  %v968_v19 = vcombine.high %v934_v8, %v950_v10 }
 0x220   : > { %v682_v20 = vcombine.low %v658_v11, %v674_v13  ;;  %v683_v21 = vcombine.high %v658_v11, %v674_v13  ;;  %v684_v22 = vcombine.low %v665_v12, %v681_v14  ;;  %v685_v23 = vcombine.high %v665_v12, %v681_v14 }
 0x221   : > { %v959_v24 = vrot.slane %v951_v15, %v2752_v38  ;;  %v966_v25 = vrot.slane %v952_v16, %v2752_v38  ;;  %v975_v26 = vrot.slane %v967_v17, %v2752_v38  ;;  %v982_v27 = vrot.slane %v968_v19, %v2752_v38 }
 0x222   : > { %v686_v28 = vpack.c.bf16 %v682_v20, %v682_v20  ;;  %v687_v29 = vpack.c.bf16 %v683_v21, %v683_v21  ;;  %v688_v30 = vpack.c.bf16 %v684_v22, %v684_v22  ;;  %v689_v31 = vpack.c.bf16 %v685_v23, %v685_v23  ;;  %v703_v7 = vpop.permute.xlu0 %702 }
 0x223   : > { %v987_v33 = vcombine.low %v959_v24, %v966_v25  ;;  %v1879_v34 = vcombine.high %v959_v24, %v966_v25  ;;  %v1003_v35 = vcombine.low %v975_v26, %v982_v27  ;;  %v1880_v36 = vcombine.high %v975_v26, %v982_v27 }
 0x224   : > { %691 = vst.msk [vmem:[#allocation2] sm:$0xf] %vm690_vm3, %v686_v28  ;;  %692 = vst.msk [vmem:[#allocation2 + $0x4] sm:$0xf] %vm690_vm3, %v687_v29  ;;  %v705_v5 = vcombine.low %v2745_v18, %v700_v4  ;;  %v706_v6 = vcombine.high %v2745_v18, %v700_v4  ;;  %v721_v8 = vcombine.low %v697_v3, %v703_v7 }
 0x225   : > { %693 = vst.msk [vmem:[#allocation2 + $0x8] sm:$0xf] %vm690_vm3, %v688_v30  ;;  %694 = vst.msk [vmem:[#allocation2 + $0xc] sm:$0xf] %vm690_vm3, %v689_v31  ;;  %v994_v37 = vrot.slane %v987_v33, %v2750_v32  ;;  %v1002_v39 = vrot.slane %v1879_v34, %v2750_v32  ;;  %v1010_v40 = vrot.slane %v1003_v35, %v2750_v32 }
 0x226   : > { %v1018_v41 = vrot.slane %v1880_v36, %v2750_v32  ;;  %v722_v9 = vcombine.high %v697_v3, %v703_v7  ;;  %v713_v10 = vrot.slane %v705_v5, %v2750_v32  ;;  %v720_v11 = vrot.slane %v706_v6, %v2750_v32 }
 0x227   : > { %v1019_v42 = vcombine.low %v994_v37, %v1002_v39  ;;  %v1020_v50 = vcombine.high %v994_v37, %v1002_v39  ;;  %v729_v12 = vrot.slane %v721_v8, %v2750_v32 }
 0x228   : > { %v1035_v43 = vcombine.low %v1010_v40, %v1018_v41  ;;  %v1036_v51 = vcombine.high %v1010_v40, %v1018_v41  ;;  %v736_v13 = vrot.slane %v722_v9, %v2750_v32 }
 0x229   : > { %v1027_v44 = vrot.slane %v1019_v42, %v2752_v38  ;;  %v1034_v58 = vrot.slane %v1020_v50, %v2752_v38  ;;  %v737_v14 = vcombine.low %v713_v10, %v729_v12  ;;  %v738_v15 = vcombine.high %v713_v10, %v729_v12 }
 0x22a   : > { %v1043_v45 = vrot.slane %v1035_v43, %v2752_v38  ;;  %v1050_v59 = vrot.slane %v1036_v51, %v2752_v38  ;;  %v753_v16 = vcombine.low %v720_v11, %v736_v13  ;;  %v754_v17 = vcombine.high %v720_v11, %v736_v13 }
 0x22b   : > { %v1059_v46 = vld [vmem:[#allocation2] sm:$0xf]  ;;  %v1060_v47 = vld [vmem:[#allocation2 + $0x4] sm:$0xf]  ;;  %v745_v19 = vrot.slane %v737_v14, %v2752_v38  ;;  %v752_v20 = vrot.slane %v738_v15, %v2752_v38 }
 0x22c   : > { %v1068_v48 = vsel %vm1063_vm4, %v1059_v46, 0  ;;  %v1114_v49 = vsel %vm1063_vm4, %v1060_v47, 0  ;;  %v1051_v52 = vcombine.low %v1027_v44, %v1043_v45  ;;  %v1052_v53 = vcombine.high %v1027_v44, %v1043_v45  ;;  %v1061_v54 = vld [vmem:[#allocation2 + $0x8] sm:$0xf]  ;;  %v1062_v55 = vld [vmem:[#allocation2 + $0xc] sm:$0xf] }
 0x22d   : > { %1953 = vmatpush3.bf16.xpose.msra.mxu1 %v1068_v48  ;;  %1959 = vmatpush3.bf16.xpose.msra.mxu0 %v1114_v49  ;;  %v1160_v60 = vsel %vm1063_vm4, %v1061_v54, 0  ;;  %v1206_v61 = vsel %vm1063_vm4, %v1062_v55, 0  ;;  %v1053_v62 = vcombine.low %v1034_v58, %v1050_v59  ;;  %v1054_v63 = vcombine.high %v1034_v58, %v1050_v59 }
 0x22e   : > { %1964 = vmatprep.subr.bf16.mxu1 %v2399_v0  ;;  %1970 = vmatprep.subr.bf16.mxu0 %v2399_v0  ;;  %v1055_v56 = vpack.c.bf16 %v1051_v52, %v1051_v52  ;;  %v1056_v57 = vpack.c.bf16 %v1052_v53, %v1052_v53  ;;  %v761_v18 = vrot.slane %v753_v16, %v2752_v38 }
 0x22f   : > { %v1057_v1 = vpack.c.bf16 %v1053_v62, %v1053_v62  ;;  %v1058_v2 = vpack.c.bf16 %v1054_v63, %v1054_v63  ;;  %v768_v21 = vrot.slane %v754_v17, %v2752_v38  ;;  %v773_v22 = vcombine.low %v745_v19, %v752_v20 }
 0x230   : > { %v1874_v23 = vcombine.high %v745_v19, %v752_v20 }
 0x231   : > { %v789_v24 = vcombine.low %v761_v18, %v768_v21  ;;  %v1875_v25 = vcombine.high %v761_v18, %v768_v21  ;;  %v780_v26 = vrot.slane %v773_v22, %v2750_v32 }
 0x232   : > { %v788_v27 = vrot.slane %v1874_v23, %v2750_v32 }
 0x233   : > { %v796_v28 = vrot.slane %v789_v24, %v2750_v32  ;;  %v804_v29 = vrot.slane %v1875_v25, %v2750_v32 }
 0x234   : > { %1955 = vmatmul.mubr.msk.bf16.vlgmr.msra.gmra.mrb[4].mxu1 %vm1063_vm4, %v1055_v56  ;;  %1961 = vmatmul.mubr.msk.bf16.vlgmr.msra.gmra.mrb[8].mxu0 %vm1063_vm4, %v1056_v57  ;;  %v805_v30 = vcombine.low %v780_v26, %v788_v27  ;;  %v806_v31 = vcombine.high %v780_v26, %v788_v27 }
 0x235   : > { %1965 = vmatpush3.bf16.xpose.msra.mxu1 %v1160_v60  ;;  %1971 = vmatpush3.bf16.xpose.msra.mxu0 %v1206_v61  ;;  %v821_v33 = vcombine.low %v796_v28, %v804_v29  ;;  %v822_v34 = vcombine.high %v796_v28, %v804_v29 }
 0x236   : > { %1966 = vmatprep.mubr.msk.bf16.mxu1 %vm2400_vm0, %v2399_v0  ;;  %1972 = vmatprep.mubr.msk.bf16.mxu0 %vm2400_vm0, %v2399_v0  ;;  %v813_v35 = vrot.slane %v805_v30, %v2752_v38  ;;  %v820_v36 = vrot.slane %v806_v31, %v2752_v38 }
 0x237   : > { %1976 = vmatprep.subr.bf16.mxu1 %v2399_v0  ;;  %1982 = vmatprep.subr.bf16.mxu0 %v2399_v0  ;;  %v829_v37 = vrot.slane %v821_v33, %v2752_v38  ;;  %v836_v39 = vrot.slane %v822_v34, %v2752_v38 }
 0x239   : > { %v837_v40 = vcombine.low %v813_v35, %v829_v37  ;;  %v838_v41 = vcombine.high %v813_v35, %v829_v37  ;;  %v839_v42 = vcombine.low %v820_v36, %v836_v39  ;;  %v840_v43 = vcombine.high %v820_v36, %v836_v39 }
 0x23b   : > { %v841_v44 = vpack.c.bf16 %v837_v40, %v837_v40  ;;  %v842_v45 = vpack.c.bf16 %v838_v41, %v838_v41  ;;  %v843_v46 = vpack.c.bf16 %v839_v42, %v839_v42  ;;  %v844_v32 = vpack.c.bf16 %v840_v43, %v840_v43  ;;  %v1497_v41 = vld [vmem:[%s2956_s6] sm:$0xf]  ;;  %v1498_v43 = vld [vmem:[%s2956_s6 + $0x4] sm:$0xf] }
 0x23c   : > { %1967 = vmatmul.mubr.msk.bf16.vlgmr.msra.gmra.mrb[8].mxu1 %vm1063_vm4, %v1057_v1  ;;  %1973 = vmatmul.mubr.msk.bf16.vlgmr.msra.gmra.mrb[12].mxu0 %vm1063_vm4, %v1058_v2  ;;  %v1505_v42 = vsel %vm1303_vm5, %v1497_v41, 0 }
 0x23d   : > { %1978 = vmatprep.mubr.msk.bf16.mxu1 %vm2400_vm0, %v2399_v0  ;;  %1984 = vmatprep.mubr.msk.bf16.mxu0 %vm2400_vm0, %v2399_v0  ;;  %845 = vst.msk [vmem:[#allocation3] sm:$0xf] %vm690_vm3, %v841_v44  ;;  %846 = vst.msk [vmem:[#allocation3 + $0x4] sm:$0xf] %vm690_vm3, %v842_v45  ;;  %v1551_v44 = vsel %vm1303_vm5, %v1498_v43, 0 }
 0x23e   : > { %847 = vst.msk [vmem:[#allocation3 + $0x8] sm:$0xf] %vm690_vm3, %v843_v46  ;;  %848 = vst.msk [vmem:[#allocation3 + $0xc] sm:$0xf] %vm690_vm3, %v844_v32 }
 0x244   : > { %v1296_v47 = vld [vmem:[#allocation3] sm:$0xf]  ;;  %v1297_v48 = vld [vmem:[#allocation3 + $0x4] sm:$0xf] }
 0x245   : > { %v1305_v38 = vsel %vm1303_vm5, %v1296_v47, 0  ;;  %v1351_v49 = vsel %vm1303_vm5, %v1297_v48, 0  ;;  %v1298_v23 = vld [vmem:[#allocation3 + $0x8] sm:$0xf]  ;;  %v1299_v24 = vld [vmem:[#allocation3 + $0xc] sm:$0xf] }
 0x246   : > { %1977 = vmatpush3.bf16.msra.mxu1 %v1305_v38  ;;  %1983 = vmatpush3.bf16.msra.mxu0 %v1351_v49  ;;  %v1397_v27 = vsel %vm1303_vm5, %v1298_v23, 0  ;;  %v1443_v29 = vsel %vm1303_vm5, %v1299_v24, 0  ;;  %v1499_v49 = vld [vmem:[%s2956_s6 + $0x8] sm:$0xf] }
 0x247   : > { %1988 = vmatprep.subr.bf16.mxu1 %v2399_v0  ;;  %1994 = vmatprep.subr.bf16.mxu0 %v2399_v0 }
 0x307   : > { %v1104_v50 = vpop.f32.mrb[4].mxu1  ;;  %v1150_v51 = vpop.f32.mrb[8].mxu0 }
 0x308   : > { %v1956_v52 = vpop.f32.mrb[5].mxu1  ;;  %v1962_v53 = vpop.f32.mrb[9].mxu0  ;;  %v1248_v54 = vsel %vm1063_vm4, %v1104_v50, -inf  ;;  %v1251_v55 = vsel %vm1063_vm4, %v1150_v51, -inf }
 0x309   : > { %1249 = vmax.xlane.f32.xlu1 %v1248_v54  ;;  %v1107_v56 = vpop.f32.mrb[6].mxu1  ;;  %1252 = vmax.xlane.f32.xlu0 %v1251_v55  ;;  %v1153_v57 = vpop.f32.mrb[10].mxu0  ;;  %v1500_v54 = vld [vmem:[%s2956_s6 + $0xc] sm:$0xf] }
 0x30a   : > { %v1957_v58 = vpop.f32.mrb[7].mxu1  ;;  %v1963_v59 = vpop.f32.mrb[11].mxu0 }
 0x30f   : > { %v1196_v60 = vpop.f32.mrb[8].mxu1  ;;  %v1242_v61 = vpop.f32.mrb[12].mxu0 }
 0x310   : > { %v1968_v62 = vpop.f32.mrb[9].mxu1  ;;  %v1974_v63 = vpop.f32.mrb[13].mxu0  ;;  %v1254_v1 = vsel %vm1063_vm4, %v1196_v60, -inf  ;;  %v1257_v2 = vsel %vm1063_vm4, %v1242_v61, -inf }
 0x311   : > { %v1199_v3 = vpop.f32.mrb[10].mxu1  ;;  %1255 = vmax.xlane.f32.xlu0 %v1254_v1  ;;  %1258 = vmax.xlane.f32.xlu1 %v1257_v2  ;;  %v1245_v4 = vpop.f32.mrb[14].mxu0  ;;  %v1643_v1 = vsel %vm1303_vm5, %v1500_v54, 0 }
 0x312   : > { %v1969_v5 = vpop.f32.mrb[11].mxu1  ;;  %v1975_v6 = vpop.f32.mrb[15].mxu0 }
 0x396   : > { %v1250_v7 = vpop.xlane.xlu1 %1249  ;;  %v1253_v8 = vpop.xlane.xlu0 %1252 }
 0x397   : > { %v1260_v9 = vsub.f32 %v1104_v50, %v1250_v7  ;;  %v1261_v10 = vsub.f32 %v1150_v51, %v1253_v8 }
 0x399   : > { %v1264_v11 = vpack.c.bf16 %v1260_v9, %v1260_v9  ;;  %v1265_v12 = vpack.c.bf16 %v1261_v10, %v1261_v10 }
 0x39b   : > { %v1269_v13 = vmul.bf16 1069105081, %v1264_v11  ;;  %v1272_v14 = vmul.bf16 1069105081, %v1265_v12 }
 0x39d   : > { %2136 = vpow.bf16 %v1269_v13 }
 0x39e   : > { %2138 = vpow.bf16 %v1272_v14  ;;  %v1256_v15 = vpop.xlane.xlu0 %1255  ;;  %v1259_v16 = vpop.xlane.xlu1 %1258 }
 0x39f   : > { %v1262_v17 = vsub.f32 %v1196_v60, %v1256_v15  ;;  %v1263_v19 = vsub.f32 %v1242_v61, %v1259_v16  ;;  %v1597_v61 = vsel %vm1303_vm5, %v1499_v49, 0 }
 0x3a1   : > { %v1266_v20 = vpack.c.bf16 %v1262_v17, %v1262_v17  ;;  %v1267_v18 = vpack.c.bf16 %v1263_v19, %v1263_v19 }
 0x3a3   : > { %v1275_v21 = vmul.bf16 1069105081, %v1266_v20  ;;  %v1278_v22 = vmul.bf16 1069105081, %v1267_v18 }
 0x3a5   : > { %2140 = vpow.bf16 %v1275_v21 }
 0x3a6   : > { %2142 = vpow.bf16 %v1278_v22 }
 0x3a8   : > { %v2137_v25 = vpop.eup %2136 }
 0x3a9   : > { %v2139_v26 = vpop.eup %2138  ;;  %1979 = vmatmul.mubr.msk.bf16.vlgmr.msra.gmra.mrb[12].mxu1 %vm1063_vm4, %v2137_v25  ;;  %v1280_v28 = vunpack.c.l.bf16 %v2137_v25 }
 0x3aa   : > { %1985 = vmatmul.mubr.msk.bf16.vlgmr.msra.gmra.mrb[16].mxu0 %vm1063_vm4, %v2139_v26  ;;  %1989 = vmatpush3.bf16.msra.mxu1 %v1397_v27  ;;  %v1281_v30 = vunpack.c.l.bf16 %v2139_v26 }
 0x3ab   : > { %1995 = vmatpush3.bf16.msra.mxu0 %v1443_v29  ;;  %v1284_v31 = vsel %vm1063_vm4, %v1280_v28, 0.0  ;;  %1990 = vmatprep.mubr.msk.bf16.mxu1 %vm2400_vm0, %v2399_v0 }
 0x3ac   : > { %1285 = vadd.xlane.f32.xlu0 %v1284_v31  ;;  %v1287_v33 = vsel %vm1063_vm4, %v1281_v30, 0.0  ;;  %1996 = vmatprep.mubr.msk.bf16.mxu0 %vm2400_vm0, %v2399_v0  ;;  %v1893_v31 = vld [vmem:[%s2990_s15] ss:$0 sm:$0xff] }
 0x3ad   : > { %1288 = vadd.xlane.f32.xlu1 %v1287_v33  ;;  %2000 = vmatprep.subr.bf16.mxu1 %v2399_v0 }
 0x3ae   : > { %2006 = vmatprep.subr.bf16.mxu0 %v2399_v0 }
 0x3b0   : > { %v2141_v34 = vpop.eup %2140 }
 0x3b1   : > { %v2143_v35 = vpop.eup %2142  ;;  %1991 = vmatmul.mubr.msk.bf16.vlgmr.msra.gmra.mrb[16].mxu1 %vm1063_vm4, %v2141_v34  ;;  %v1282_v36 = vunpack.c.l.bf16 %v2141_v34 }
 0x3b2   : > { %1997 = vmatmul.mubr.msk.bf16.vlgmr.msra.gmra.mrb[20].mxu0 %vm1063_vm4, %v2143_v35  ;;  %v1283_v37 = vunpack.c.l.bf16 %v2143_v35  ;;  %2002 = vmatprep.mubr.msk.bf16.mxu1 %vm2400_vm0, %v2399_v0 }
 0x3b3   : > { %v1290_v39 = vsel %vm1063_vm4, %v1282_v36, 0.0  ;;  %2008 = vmatprep.mubr.msk.bf16.mxu0 %vm2400_vm0, %v2399_v0  ;;  %2001 = vmatpush3.bf16.msra.mxu1 %v1505_v42 }
 0x3b4   : > { %1291 = vadd.xlane.f32.xlu0 %v1290_v39  ;;  %v1293_v40 = vsel %vm1063_vm4, %v1283_v37, 0.0  ;;  %2012 = vmatprep.subr.bf16.mxu1 %v2399_v0 }
 0x3b5   : > { %1294 = vadd.xlane.f32.xlu1 %v1293_v40  ;;  %2007 = vmatpush3.bf16.msra.mxu0 %v1551_v44 }
 0x3b6   : > { %2018 = vmatprep.subr.bf16.mxu0 %v2399_v0 }
 0x439   : > { %v1286_v45 = vpop.xlane.xlu0 %1285 }
 0x43a   : > { %v1289_v46 = vpop.xlane.xlu1 %1288  ;;  %2144 = vrcp.f32 %v1286_v45 }
 0x43b   : > { %2146 = vrcp.f32 %v1289_v46 }
 0x441   : > { %v1292_v32 = vpop.xlane.xlu0 %1291 }
 0x442   : > { %v1295_v47 = vpop.xlane.xlu1 %1294  ;;  %2148 = vrcp.f32 %v1292_v32 }
 0x443   : > { %2150 = vrcp.f32 %v1295_v47 }
 0x444   : > { %v2145_v48 = vpop.eup %2144 }
 0x445   : > { %v2147_v50 = vpop.eup %2146 }
 0x44c   : > { %v2149_v2 = vpop.eup %2148 }
 0x44d   : > { %v2151_v4 = vpop.eup %2150 }
 0x47c   : > { %v1341_v38 = vpop.f32.mrb[12].mxu1 }
 0x47d   : > { %v1489_v51 = vmul.f32 %v2145_v48, %v1341_v38  ;;  %v1387_v52 = vpop.f32.mrb[16].mxu0  ;;  %v1980_v53 = vpop.f32.mrb[13].mxu1 }
 0x47e   : > { %v1490_v55 = vmul.f32 %v2147_v50, %v1387_v52  ;;  %v1986_v56 = vpop.f32.mrb[17].mxu0  ;;  %v1344_v57 = vpop.f32.mrb[14].mxu1 }
 0x47f   : > { %v1493_v58 = vpack.c.bf16 %v1489_v51, %v1489_v51  ;;  %v1390_v59 = vpop.f32.mrb[18].mxu0  ;;  %v1981_v60 = vpop.f32.mrb[15].mxu1 }
 0x480   : > { %v1494_v62 = vpack.c.bf16 %v1490_v55, %v1490_v55  ;;  %v1987_v63 = vpop.f32.mrb[19].mxu0 }
 0x481   : > { %2003 = vmatmul.mubr.msk.bf16.vlgmr.msra.gmra.mrb[20].mxu1 %vm1063_vm4, %v1493_v58 }
 0x482   : > { %2009 = vmatmul.mubr.msk.bf16.vlgmr.msra.gmra.mrb[24].mxu0 %vm1063_vm4, %v1494_v62  ;;  %2013 = vmatpush3.bf16.msra.mxu1 %v1597_v61 }
 0x483   : > { %2019 = vmatpush3.bf16.msra.mxu0 %v1643_v1  ;;  %2014 = vmatprep.mubr.msk.bf16.mxu1 %vm2400_vm0, %v2399_v0 }
 0x484   : > { %v1433_v3 = vpop.f32.mrb[16].mxu1  ;;  %2020 = vmatprep.mubr.msk.bf16.mxu0 %vm2400_vm0, %v2399_v0 }
 0x485   : > { %v1491_v5 = vmul.f32 %v2149_v2, %v1433_v3  ;;  %v1479_v6 = vpop.f32.mrb[20].mxu0  ;;  %v1992_v7 = vpop.f32.mrb[17].mxu1 }
 0x486   : > { %v1492_v8 = vmul.f32 %v2151_v4, %v1479_v6  ;;  %v1998_v9 = vpop.f32.mrb[21].mxu0  ;;  %v1436_v10 = vpop.f32.mrb[18].mxu1 }
 0x487   : > { %v1495_v11 = vpack.c.bf16 %v1491_v5, %v1491_v5  ;;  %v1482_v12 = vpop.f32.mrb[22].mxu0  ;;  %v1993_v13 = vpop.f32.mrb[19].mxu1 }
 0x488   : > { %v1496_v14 = vpack.c.bf16 %v1492_v8, %v1492_v8  ;;  %v1999_v15 = vpop.f32.mrb[23].mxu0 }
 0x489   : > { %2015 = vmatmul.mubr.msk.bf16.vlgmr.msra.gmra.mrb[24].mxu1 %vm1063_vm4, %v1495_v11 }
 0x48a   : > { %2021 = vmatmul.mubr.msk.bf16.vlgmr.msra.gmra.mrb[28].mxu0 %vm1063_vm4, %v1496_v14 }
 0x554   : > { %v1541_v16 = vpop.f32.mrb[20].mxu1 }
 0x555   : > { %v1686_v0 = vsel %vm440_vm1, %v1541_v16, 0.0  ;;  %v1587_v17 = vpop.f32.mrb[24].mxu0  ;;  %v2004_v19 = vpop.f32.mrb[21].mxu1 }
 0x556   : > { %v1687_v20 = vsel %vm440_vm1, %v1587_v17, 0.0  ;;  %v2010_v18 = vpop.f32.mrb[25].mxu0  ;;  %v1544_v21 = vpop.f32.mrb[22].mxu1 }
 0x557   : > { %v1688_v22 = vadd.f32 %v1687_v20, %v1686_v0  ;;  %v1590_v23 = vpop.f32.mrb[26].mxu0  ;;  %v2005_v24 = vpop.f32.mrb[23].mxu1 }
 0x558   : > { %v2011_v25 = vpop.f32.mrb[27].mxu0 }
 0x55c   : > { %v1633_v26 = vpop.f32.mrb[24].mxu1 }
 0x55d   : > { %v1689_v27 = vsel %vm440_vm1, %v1633_v26, 0.0  ;;  %v1679_v28 = vpop.f32.mrb[28].mxu0  ;;  %v2016_v29 = vpop.f32.mrb[25].mxu1 }
 0x55e   : > { %v1690_v30 = vadd.f32 %v1689_v27, %v1688_v22  ;;  %v2022_v33 = vpop.f32.mrb[29].mxu0  ;;  %v1636_v34 = vpop.f32.mrb[26].mxu1  ;;  %v1691_v35 = vsel %vm440_vm1, %v1679_v28, 0.0 }
 0x55f   : > { %v1682_v36 = vpop.f32.mrb[30].mxu0  ;;  %v2017_v37 = vpop.f32.mrb[27].mxu1 }
 0x560   : > { %v1692_v39 = vadd.f32 %v1691_v35, %v1690_v30  ;;  %v2023_v40 = vpop.f32.mrb[31].mxu0 }
 0x562   : > { %v1700_v41 = vadd.f32 %v1893_v31, %v1692_v39 }
 0x564   : > { %1701 = vst.msk [vmem:[%s417_s11] sm:$0xff] %vm440_vm1, %v1700_v41 }
 0x565   : > { %2309 = shalt.err (!%p2306_p5)
}
 0x566   : > { %s2310_s26 = scalar_lea.hbm %s2900_s24, 128  ;;  %s2314_s21 = scalar_lea.hbm %s2992_s2, 256 }
 0x567   : > { %p2311_p6 = scmp.ne.s32.totalorder %s2900_s24, %s2310_s26  ;;  %p2315_p12 = scmp.lt.u32.totalorder %s2900_s24, %s2992_s2 }
 0x568   : > { %p2316_p11 = scmp.lt.u32.totalorder %s2314_s21, %s2310_s26  ;;  %p2318_p0 = scmp.lt.u32.totalorder %s2310_s26, %s2900_s24 }
 0x569   : > { %p2312_p10 = pnand %p2311_p6, %p2993_p2 }
 0x56a   : > { %p2317_p9 = por %p2316_p11, %p2315_p12 }
 0x56b   : > { %p2313_p7 = pneg %p2312_p10 }
 0x56c   : > { %p2319_p4 = por %p2318_p0, %p2317_p9 }
 0x56e   : > { %p2320_p8 = pnand %p2319_p4, %p2313_p7 }
 0x570   : > { %2323 = shalt.err (!%p2320_p8)
}
 0x571   : > { %2040 = dma.vmem_to_hbm [thread:$0]  (%p2993_p2), %s2902_s13, 128, %s2900_s24, %s1703_s4  }
 0x572 PF: > { %s2994_s15 = sld [smem:[#allocation19_spill]]  ;;  %s2995_s16 = sld [smem:[#allocation20_spill]] }
 0x573   : > { %p2997_p13 = scmp.ge.s32.totalorder %s2390_s10, 2 }
 0x578   : > { %s1729_s11 = sand.u32 1, %s2994_s15   ;;  %p2996_p1 = scmp.ne.s32.totalorder %s2995_s16, 0 }
 0x579   : > { %s1730_s7 = scalar_lea.sflag [#allocation6], %s1729_s11 }
 0x57a   : > { %p2060_p3 = pnand %p2997_p13, %p2996_p1 }
 0x57c   : > { %2365 = dma.done.wait (!%p2060_p3), %s1730_s7, 128  }
 0x57d   : > { %2367 = vsyncadd (!%p2060_p3), %s1730_s7, 4294967168  ;;  %s28_s10 = sadd.s32 1, %s2390_s10   ;;  %s2998_s27 = smov %s2374_s28 }
 0x57e   : > { %p25_p5 = scmp.ge.s32.totalorder %s28_s10, 4   ;;  %s2999_s28 = smov %s2378_s29 }
 0x57f   : > { %s3000_s29 = smov %s2622_s25  ;;  %s3001_s30 = smov %s2386_s9 }
 0x580   : > { %s3002_s9 = smov %s3004_s18  ;;  %27 = sbr.rel (!%p25_p5) target bundleno = 15 (0xf), region = 126 }
 0x587   :  { %1735 = vsyncpa [#allocation5], 1 }
 0x588   :  { %1737 = vsyncpa [#allocation5 + $0x1], 1 }
 0x589   :  { %1738 = vsyncpa [#allocation8], 1 }
 0x58a   :  { %1740 = vsyncpa [#allocation8 + $0x1], 1 }
 0x58b   :  { %1741 = vsyncpa [#allocation11], 1 }
 0x58c   :  { %1742 = vsyncpa [#allocation6], 1 }
 0x58d   :  { %1744 = vsyncpa [#allocation6 + $0x1], 1 }

</bundles_post_ra>
